<compile_context>
chip_gen: v7x
topology: tpu7x:2x2x1
jax: 0.10.0
libtpu: 0.0.40
codegen_flags: <defaults>
</compile_context>

<pallas_src>
import jax
import jax.numpy as jnp
from jax.experimental import pallas as pl
from jax.experimental.pallas import tpu as pltpu


# -----------------------------------------------------------------------------
# Kernels
# -----------------------------------------------------------------------------
def _identity_alias_kernel(x_ref, o_ref):
    # The output buffer IS the input buffer (input_output_aliases={0: 0}), so
    # the data is already in place and nothing needs to move.  touch() adds a
    # fake read+write dependency on the aliased output so the otherwise empty
    # kernel / output is not dead-code-eliminated.
    del x_ref
    pltpu.touch(o_ref)


def _identity_dma_copy_kernel(x_hbm_ref, o_hbm_ref, sem):
    # Fresh-buffer variant: a single whole-array HBM->HBM DMA, no VMEM staging.
    cp = pltpu.make_async_copy(x_hbm_ref, o_hbm_ref, sem)
    cp.start()
    cp.wait()


# -----------------------------------------------------------------------------
# Wrappers
# -----------------------------------------------------------------------------
def _aliased_call(x):
    return pl.pallas_call(
        _identity_alias_kernel,
        out_shape=jax.ShapeDtypeStruct(x.shape, x.dtype),
        in_specs=[pl.BlockSpec(memory_space=pl.ANY)],
        out_specs=pl.BlockSpec(memory_space=pl.ANY),
        input_output_aliases={0: 0},        # output 0 reuses input 0's buffer
        cost_estimate=pl.CostEstimate(flops=0, transcendentals=0,
                                      bytes_accessed=0),
    )(x)


def identity_pallas_copy(x):
    """Identity that materializes a fresh buffer via one whole-array HBM->HBM DMA."""
    if x.size == 0:
        return x
    src = x.reshape(1) if x.ndim == 0 else x   # give the DMA a non-0-d ref
    itemsize = jnp.dtype(x.dtype).itemsize
    out = pl.pallas_call(
        _identity_dma_copy_kernel,
        out_shape=jax.ShapeDtypeStruct(src.shape, src.dtype),
        in_specs=[pl.BlockSpec(memory_space=pl.ANY)],
        out_specs=pl.BlockSpec(memory_space=pl.ANY),
        scratch_shapes=[pltpu.SemaphoreType.DMA],
        cost_estimate=pl.CostEstimate(flops=0, transcendentals=0,
                                      bytes_accessed=2 * x.size * itemsize),
    )(src)
    return out.reshape(x.shape)


_ALIAS_PATH_OK = True   # flipped off once if the no-op alias path fails to lower


def identity_pallas(x):
    """IdentityLayer.forward(x): y = x, with zero data movement."""
    global _ALIAS_PATH_OK
    if x.size == 0:
        return x
    if _ALIAS_PATH_OK:
        try:
            return _aliased_call(x)
        except Exception:            # robustness fallback: still correct & fast
            _ALIAS_PATH_OK = False
    # Fallback: a single whole-array HBM->HBM DMA copy.
    return identity_pallas_copy(x)


# -----------------------------------------------------------------------------
# Self-test
# -----------------------------------------------------------------------------
if __name__ == "__main__":
    key = jax.random.PRNGKey(0)
    k1, k2 = jax.random.split(key)

    # NCHW-style input consistent with the module's typical use.
    x1 = jax.random.normal(k1, (2, 4, 16, 16), dtype=jnp.float32)
    y1 = identity_pallas(x1)
    jax.block_until_ready(y1)
    assert y1.shape == x1.shape and y1.dtype == x1.dtype
    assert bool(jnp.all(y1 == x1))

    # Odd, non-(8,128)-friendly shape + packed dtype: both paths are
    # shape-agnostic (no BlockSpec tiling anywhere).
    x2 = jax.random.normal(k2, (3, 5, 7), dtype=jnp.bfloat16)
    y2 = identity_pallas(x2)
    jax.block_until_ready(y2)
    assert y2.shape == x2.shape and y2.dtype == x2.dtype
    assert bool(jnp.all(y2 == x2))

    # Fresh-buffer variant (single whole-array DMA).
    z1 = identity_pallas_copy(x1)
    jax.block_until_ready(z1)
    assert z1.shape == x1.shape and z1.dtype == x1.dtype
    assert bool(jnp.all(z1 == x1))

    print("KERNEL_OK")
</pallas_src>

<mosaic_0001>
module attributes {stable_mosaic.version = 11 : i64} {
  func.func @_identity_alias_kernel(%arg0: memref<2x4x16x16xf32, #tpu.memory_space<any>>, %arg1: memref<2x4x16x16xf32, #tpu.memory_space<any>>) attributes {dimension_semantics = [], scalar_prefetch = 0 : i64, scratch_operands = 0 : i64, tpu.core_type = #tpu.core_type<tc>} {
    return
  }
}

module attributes {stable_mosaic.version = 11 : i64} {
  func.func @_identity_dma_copy_kernel(%arg0: memref<2x4x16x16xf32, #tpu.memory_space<any>>, %arg1: memref<2x4x16x16xf32, #tpu.memory_space<any>>, %arg2: memref<!tpu.dma_semaphore, #tpu.memory_space<semaphore_mem>>) attributes {dimension_semantics = [], scalar_prefetch = 0 : i64, scratch_operands = 1 : i64, tpu.core_type = #tpu.core_type<tc>} {
    tpu.enqueue_dma source(%arg0 : memref<2x4x16x16xf32, #tpu.memory_space<any>>) target(%arg1 : memref<2x4x16x16xf32, #tpu.memory_space<any>>) target_semaphore(%arg2 : memref<!tpu.dma_semaphore, #tpu.memory_space<semaphore_mem>>)
    tpu.wait_dma2 semaphore(%arg2 : memref<!tpu.dma_semaphore, #tpu.memory_space<semaphore_mem>>) src(%arg0 : memref<2x4x16x16xf32, #tpu.memory_space<any>>) dst(%arg1 : memref<2x4x16x16xf32, #tpu.memory_space<any>>)
    return
  }
}

</mosaic_0001>

<bundles_post_ra>
// kernel: tpu_custom_call.1
= control target key start
LH: loop header
LB: loop body
LE: loop exit
PB: predicated region body
PF: predicated region fallthrough
CT: control target
= control target key end

     0   :  { %s16_s0 = inlined_call_operand.hbm [shape: f32[2,4,16,16], index: 0, kind: input, shape index: {}, may-alias: {0,1}]   ;;  %s17_s1 = inlined_call_operand.hbm [shape: f32[2,4,16,16], index: 1, kind: output, shape index: {}, may-alias: {0,1}]  }

// kernel: tpu_custom_call.1
= control target key start
LH: loop header
LB: loop body
LE: loop exit
PB: predicated region body
PF: predicated region fallthrough
CT: control target
= control target key end

     0   :  { %s36_s6 = smov [#allocation2]   ;;  %s37_s7 = smov [#allocation3]   ;;  %s55_s0 = inlined_call_operand.hbm [shape: f32[2,4,16,16], index: 0, kind: input, shape index: {}]   ;;  %s56_s1 = inlined_call_operand.hbm [shape: f32[2,4,16,16], index: 1, kind: output, shape index: {}]  }
   0x1   :  { %s38_s8 = smov 0  }
   0x2   :  { %18 = dma.general %s55_s0, 2048, %s56_s1, %s36_s6, %s37_s7, [#allocation4], %s38_s8, 0  }
   0x3   :  { %34 = dma.done.wait [#allocation2], 2048 }
   0x4   :  { %35 = vsyncadd [#allocation2], 4294965248 }
   0x5   :  { %24 = vsyncmov [#allocation2] }
   0x8   :  { %s25_s13 = vpop.sfrf %24 }
   0x9   :  { %p30_p0 = scmp.ne.s32.totalorder %s25_s13, 0 }
   0xb   :  { %29 = shalt.err (%p30_p0)  }

</bundles_post_ra>
